<compile_context>
chip_gen: v7x
topology: tpu7x:2x2x1
jax: 0.10.0
libtpu: 0.0.40
codegen_flags: <defaults>
</compile_context>

<pallas_src>
import math
from functools import partial

import jax
import jax.numpy as jnp
from jax import lax
from jax.experimental import pallas as pl
from jax.experimental.pallas import tpu as pltpu


def make_positional_encode(time_steps: int, embed_dim: int) -> jnp.ndarray:
    """Replicates PositionalEncoder.do_positional_encode -> (time_steps, D)."""
    pos = jnp.arange(time_steps, dtype=jnp.float32)[:, None]            # (T, 1)
    col = jnp.arange(embed_dim, dtype=jnp.float32)[None, :]             # (1, D)
    angle = pos / jnp.power(10000.0, 2.0 * col / float(embed_dim))      # (T, D)
    is_even = (jnp.arange(embed_dim) % 2) == 0
    return jnp.where(is_even[None, :], jnp.sin(angle), jnp.cos(angle)).astype(jnp.float32)


def _hash_u32(x):
    """lowbias32 integer hash — good avalanche, pure VPU int ops."""
    x = x ^ (x >> 16)
    x = x * jnp.uint32(0x7FEB352D)
    x = x ^ (x >> 15)
    x = x * jnp.uint32(0x846CA68B)
    x = x ^ (x >> 16)
    return x


def _pos_enc_dropout_kernel(x_ref, pe_ref, o_ref, *, x_scale, threshold, seed,
                            tile_r, lanes, rows_padded):
    # x_ref / pe_ref / o_ref: (tile_r, lanes) f32 blocks (batch dim squeezed).
    y = x_ref[...] * jnp.float32(x_scale) + pe_ref[...]

    if threshold > 0:  # static: dropout enabled
        b = pl.program_id(0)
        r = pl.program_id(1)
        row = lax.broadcasted_iota(jnp.int32, (tile_r, lanes), 0) + r * tile_r
        col = lax.broadcasted_iota(jnp.int32, (tile_r, lanes), 1)
        # Unique counter per (batch, element); hashed with the seed -> uniform u32.
        counter = (b * rows_padded + row) * lanes + col
        bits = _hash_u32(counter.astype(jnp.uint32) ^ jnp.uint32(seed))
        keep = bits >= jnp.uint32(threshold)          # P(drop) = threshold / 2^32
        y = jnp.where(keep, y, 0.0)

    o_ref[...] = y.astype(o_ref.dtype)


def positional_encoder_forward(x, pe_table, *, dropout_p=0.1, seed=0):
    """x: (B, S, D) float32; pe_table: (time_steps, D) float32."""
    B, S, D = x.shape
    assert pe_table.shape[0] >= S and pe_table.shape[1] == D
    pe = pe_table[:S].astype(jnp.float32)             # pe[:, :x.size(1)]

    scale = math.sqrt(D)
    if dropout_p > 0.0:
        inv_keep = 1.0 / (1.0 - dropout_p)
        x_scale = scale * inv_keep                    # fold 1/(1-p) into the x scale
        pe = pe * jnp.float32(inv_keep)               # ...and into the (tiny) PE table
        threshold = min(int(round(dropout_p * (1 << 32))), (1 << 32) - 1)
    else:
        x_scale = scale
        threshold = 0

    # Lane-dense layout: if D is narrower than the 128-lane vreg, fold (S, D)
    # -> (R, 128) (same fold on PE) so every load/store uses all lanes.
    total = S * D
    lanes = 128 if (D < 128 and total % 128 == 0) else D
    R = total // lanes
    x2 = x.reshape(B, R, lanes)
    pe2 = pe.reshape(R, lanes)

    # ~2 MiB blocks: 85%+ of HBM roofline on v6e, comfortably inside v7x's
    # smaller scoped VMEM even double-buffered (x + out + shared pe).
    tile_r = max(8, (2 << 20) // (lanes * 4))
    if R <= tile_r:
        tile_r = R                                    # full-extent block (small inputs)
    else:
        tile_r = (tile_r // 8) * 8                    # keep (8, 128) alignment
    grid_r = pl.cdiv(R, tile_r)
    rows_padded = grid_r * tile_r

    kernel = partial(
        _pos_enc_dropout_kernel,
        x_scale=x_scale, threshold=threshold, seed=seed & 0xFFFFFFFF,
        tile_r=tile_r, lanes=lanes, rows_padded=rows_padded,
    )

    out2 = pl.pallas_call(
        kernel,
        out_shape=jax.ShapeDtypeStruct((B, R, lanes), x.dtype),
        grid=(B, grid_r),
        in_specs=[
            pl.BlockSpec((None, tile_r, lanes), lambda b, r: (b, r, 0)),  # x (batch squeezed)
            pl.BlockSpec((tile_r, lanes), lambda b, r: (r, 0)),           # pe (shared over batch)
        ],
        out_specs=pl.BlockSpec((None, tile_r, lanes), lambda b, r: (b, r, 0)),
        compiler_params=pltpu.CompilerParams(
            dimension_semantics=("parallel", "parallel"),   # both axes shardable (v7x megacore)
        ),
    )(x2, pe2)

    return out2.reshape(B, S, D)


if __name__ == "__main__":
    # Small shapes consistent with the module: batch=2, seq(time)=8, embed=32.
    B, S, D = 2, 8, 32
    TIME_STEPS = 40
    DROPOUT_P = 0.1

    key = jax.random.PRNGKey(0)
    x = jax.random.normal(key, (B, S, D), dtype=jnp.float32)

    pe_table = make_positional_encode(TIME_STEPS, D)

    out = positional_encoder_forward(x, pe_table, dropout_p=DROPOUT_P, seed=1234)
    out = jax.block_until_ready(out)

    assert out.shape == (B, S, D) and out.dtype == jnp.float32

    # Sanity: every kept element equals (x*sqrt(D) + PE) / (1-p).
    ref = x * math.sqrt(D) + pe_table[:S][None, :, :]
    kept = out != 0.0
    diff = jnp.where(kept, out * (1.0 - DROPOUT_P) - ref, 0.0)
    assert float(jnp.max(jnp.abs(diff))) < 1e-4

    print("KERNEL_OK")
</pallas_src>

<mosaic_0001>
module attributes {stable_mosaic.version = 11 : i64} {
  func.func @_pos_enc_dropout_kernel(%arg0: i32, %arg1: i32, %arg2: memref<1x2x128xf32, #tpu.memory_space<vmem>>, %arg3: memref<2x128xf32, #tpu.memory_space<vmem>>, %arg4: memref<1x2x128xf32, #tpu.memory_space<vmem>>) attributes {dimension_semantics = [#tpu.dimension_semantics<parallel>, #tpu.dimension_semantics<parallel>], iteration_bounds = array<i64: 2, 1>, scalar_prefetch = 0 : i64, scratch_operands = 0 : i64, tpu.core_type = #tpu.core_type<tc>, window_params = [{transform_indices = @transform_0, window_bounds = array<i64: 1, 2, 128>}, {transform_indices = @transform_1, window_bounds = array<i64: 2, 128>}, {transform_indices = @transform_2, window_bounds = array<i64: 1, 2, 128>}]} {
    %c0 = arith.constant 0 : index
    %c0_0 = arith.constant 0 : index
    %c0_1 = arith.constant 0 : index
    %0 = vector.load %arg2[%c0, %c0_0, %c0_1] : memref<1x2x128xf32, #tpu.memory_space<vmem>>, vector<1x2x128xf32>
    %1 = vector.shape_cast %0 : vector<1x2x128xf32> to vector<2x128xf32>
    %cst = arith.constant 6.28539371 : f32
    %2 = vector.broadcast %cst : f32 to vector<2x128xf32>
    %3 = arith.mulf %1, %2 : vector<2x128xf32>
    %c0_2 = arith.constant 0 : index
    %c0_3 = arith.constant 0 : index
    %4 = vector.load %arg3[%c0_2, %c0_3] : memref<2x128xf32, #tpu.memory_space<vmem>>, vector<2x128xf32>
    %5 = arith.addf %3, %4 : vector<2x128xf32>
    %6 = tpu.iota {dimensions = array<i32: 0>} : vector<2x128xi32>
    %c2_i32 = arith.constant 2 : i32
    %7 = arith.muli %arg1, %c2_i32 : i32
    %8 = vector.broadcast %7 : i32 to vector<2x128xi32>
    %9 = arith.addi %6, %8 : vector<2x128xi32>
    %10 = tpu.iota {dimensions = array<i32: 1>} : vector<2x128xi32>
    %c2_i32_4 = arith.constant 2 : i32
    %11 = arith.muli %arg0, %c2_i32_4 : i32
    %12 = vector.broadcast %11 : i32 to vector<2x128xi32>
    %13 = arith.addi %12, %9 : vector<2x128xi32>
    %c128_i32 = arith.constant 128 : i32
    %14 = vector.broadcast %c128_i32 : i32 to vector<2x128xi32>
    %15 = arith.muli %13, %14 : vector<2x128xi32>
    %16 = arith.addi %15, %10 : vector<2x128xi32>
    %c1234_i32 = arith.constant 1234 : i32
    %17 = vector.broadcast %c1234_i32 : i32 to vector<2x128xi32>
    %18 = arith.xori %16, %17 : vector<2x128xi32>
    %c16_i32 = arith.constant 16 : i32
    %19 = vector.broadcast %c16_i32 : i32 to vector<2x128xi32>
    %20 = arith.shrui %18, %19 : vector<2x128xi32>
    %21 = arith.xori %18, %20 : vector<2x128xi32>
    %c2146121005_i32 = arith.constant 2146121005 : i32
    %22 = vector.broadcast %c2146121005_i32 : i32 to vector<2x128xi32>
    %23 = arith.muli %21, %22 : vector<2x128xi32>
    %c15_i32 = arith.constant 15 : i32
    %24 = vector.broadcast %c15_i32 : i32 to vector<2x128xi32>
    %25 = arith.shrui %23, %24 : vector<2x128xi32>
    %26 = arith.xori %23, %25 : vector<2x128xi32>
    %c-2073254261_i32 = arith.constant -2073254261 : i32
    %27 = vector.broadcast %c-2073254261_i32 : i32 to vector<2x128xi32>
    %28 = arith.muli %26, %27 : vector<2x128xi32>
    %c16_i32_5 = arith.constant 16 : i32
    %29 = vector.broadcast %c16_i32_5 : i32 to vector<2x128xi32>
    %30 = arith.shrui %28, %29 : vector<2x128xi32>
    %31 = arith.xori %28, %30 : vector<2x128xi32>
    %c429496730_i32 = arith.constant 429496730 : i32
    %32 = vector.broadcast %c429496730_i32 : i32 to vector<2x128xi32>
    %33 = arith.cmpi uge, %31, %32 : vector<2x128xi32>
    %cst_6 = arith.constant 0.000000e+00 : f32
    %34 = vector.broadcast %cst_6 : f32 to vector<2x128xf32>
    %35 = arith.select %33, %5, %34 : vector<2x128xi1>, vector<2x128xf32>
    %c0_7 = arith.constant 0 : index
    %c0_8 = arith.constant 0 : index
    %c0_9 = arith.constant 0 : index
    %36 = vector.load %arg4[%c0_7, %c0_8, %c0_9] : memref<1x2x128xf32, #tpu.memory_space<vmem>>, vector<1x2x128xf32>
    %37 = vector.shape_cast %36 : vector<1x2x128xf32> to vector<2x128xf32>
    %38 = vector.shape_cast %35 : vector<2x128xf32> to vector<1x2x128xf32>
    tpu.vector_store %arg4[%c0_7, %c0_8, %c0_9], %38 {strides = array<i32>} : memref<1x2x128xf32, #tpu.memory_space<vmem>>, vector<1x2x128xf32>,
    return
  }
  func.func @transform_0(%arg0: i32, %arg1: i32) -> (i32, i32, i32) {
    %c0_i32 = arith.constant 0 : i32
    %c0_i32_0 = arith.constant 0 : i32
    return %arg0, %arg1, %c0_i32 : i32, i32, i32
  }
  func.func @transform_1(%arg0: i32, %arg1: i32) -> (i32, i32) {
    %c0_i32 = arith.constant 0 : i32
    %c0_i32_0 = arith.constant 0 : i32
    return %arg1, %c0_i32 : i32, i32
  }
  func.func @transform_2(%arg0: i32, %arg1: i32) -> (i32, i32, i32) {
    %c0_i32 = arith.constant 0 : i32
    %c0_i32_0 = arith.constant 0 : i32
    return %arg0, %arg1, %c0_i32 : i32, i32, i32
  }
}

</mosaic_0001>

<bundles_post_ra>
// kernel: tpu_custom_call.1
= control target key start
LH: loop header
LB: loop body
LE: loop exit
PB: predicated region body
PF: predicated region fallthrough
CT: control target
= control target key end

     0   :  { %7 = vsyncpa [#allocation3], 0  ;;  %s715_s0 = inlined_call_operand.hbm [shape: f32[2,2,128], index: 0, kind: input, shape index: {}]   ;;  %s716_s1 = inlined_call_operand.vmem [shape: f32[2,128], index: 1, kind: input, shape index: {}]   ;;  %s717_s2 = inlined_call_operand.hbm [shape: f32[2,2,128], index: 2, kind: output, shape index: {}]  }
   0x1   :  { %9 = vsyncpa [#allocation3 + $0x1], 0 }
   0x2   :  { %10 = vsyncpa [#allocation4], 0 }
   0x3   :  { %12 = vsyncpa [#allocation4 + $0x1], 0  ;;  %s539_s9 = smov 0   ;;  %s541_s10 = smov 0  }
   0x4   :  { %s543_s11 = smov 0   ;;  %s545_s12 = smov 0  }
   0x5   :  { %s547_s13 = smov 0   ;;  %s549_s14 = smov 0  }
   0x6 LB: > { %s331_s15 = sadd.s32 4294967295, %s520_s14   ;;  %s332_s16 = sadd.s32 4294967294, %s520_s14   ;;  %s520_s14 = sphi %s549_s14, %s18_s14   ;;  %s516_s13 = sphi %s547_s13, %s733_s13   ;;  %s512_s12 = sphi %s545_s12, %s732_s12   ;;  %s508_s11 = sphi %s543_s11, %s731_s11   ;;  %s504_s10 = sphi %s541_s10, %s730_s10   ;;  %s500_s9 = sphi %s539_s9, %s729_s9  }
   0x7   : > { %s30_s17 = sadd.s32 1, %s516_s13  ;;  %s39_s18 = sadd.s32 1, %s508_s11 }
   0x8   : > { %p32_p0 = scmp.ge.s32.totalorder %s30_s17, 2  ;;  %p46_p1 = scmp.ne.s32.totalorder %s508_s11, %s504_s10 }
   0x9   : > { %p47_p2 = scmp.eq.s32.totalorder %s520_s14, 0  ;;  %p52_p3 = scmp.ne.s32.totalorder %s504_s10, %s500_s9 }
   0xa   : > { %s735_s17 = smov (%p32_p0, %s30_s17), 0  ;;  %p53_p5 = scmp.eq.s32.totalorder %s331_s15, 0 }
   0xb   : > { %p580_p4 = por %p47_p2, %p46_p1  ;;  %s34_s20 = ssub.s32 %s516_s13, %s735_s17 }
   0xc   : > { %p104_p6 = scmp.eq.s32.totalorder %s331_s15, 1  ;;  %p37_p7 = scmp.eq.s32.totalorder %s34_s20, 0 }
   0xd   : > { %p586_p8 = por %p53_p5, %p52_p3  ;;  %p110_p10 = scmp.eq.s32.totalorder %s332_s16, 1 }
   0xe   : > { %p590_p9 = por %p104_p6, %p46_p1  ;;  %p358_p13 = scmp.lt.s32.totalorder %s520_s14, 2 }
   0xf   : > { %s595_s23 = scalar_select %p37_p7, %s508_s11, %s39_s18  }
  0x10   : > { %s721_s22 = scalar_select %p590_p9, 1, 0 }
  0x11   : > { %p597_p11 = por %p110_p10, %p52_p3  ;;  %s137_s25 = sand.u32 1, %s508_s11  }
  0x12   : > { %s336_s26 = sshll.u32 %s137_s25, 1  ;;  %s337_s27 = sshll.u32 %s516_s13, 5 }
  0x13   : > { %s722_s24 = scalar_select %p597_p11, 1, 0 }
  0x14   : > { %s608_s30 = scalar_lea.hbm %s715_s0, %s337_s27  ;;  %s141_s3 = scalar_lea.vmem [#allocation2], %s336_s26 }
  0x15   : > { %s149_s4 = sshll.u32 %s141_s3, 4  ;;  %p614_p0 = pnand %p358_p13, %p580_p4  ;;  %s610_s4 = int_to_ptr.vmem [resolvable:$true] %s149_s4 }
  0x16   : > { %s138_s6 = scalar_lea.sflag [#allocation3], %s137_s25  ;;  %s408_s7 = scalar_lea.hbm %s608_s30, 32 }
  0x17   : > { %p409_p3 = scmp.ne.s32.totalorder %s608_s30, %s408_s7  ;;  %p410_p5 = pneg %p614_p0 }
  0x18   : > { %s413_s16 = scalar_lea.hbm %s715_s0, 64  ;;  %p414_p4 = scmp.lt.u32.totalorder %s608_s30, %s715_s0 }
  0x19   : > { %p411_p6 = pnand %p410_p5, %p409_p3  ;;  %p415_p10 = scmp.lt.u32.totalorder %s413_s16, %s408_s7 }
  0x1a   : > { %p417_p12 = scmp.lt.u32.totalorder %s408_s7, %s608_s30 }
  0x1b   : > { %p412_p7 = pneg %p411_p6  ;;  %p416_p13 = por %p415_p10, %p414_p4 }
  0x1d   : > { %p418_p1 = por %p417_p12, %p416_p13 }
  0x1f   : > { %p419_p2 = pnand %p418_p1, %p412_p7 }
  0x21   : > { %422 = shalt.err (!%p419_p2)
}
  0x22   : > { %s423_s20 = scalar_lea.vmem %s610_s4, 32  ;;  %s522_s25 = smov [#allocation2]  }
  0x23   : > { %p424_p3 = scmp.ne.s32.totalorder %s610_s4, %s423_s20  ;;  %s428_s26 = sshll.u32 %s522_s25, 4  ;;  %s429_s26 = int_to_ptr.vmem [resolvable:$false] %s428_s26 }
  0x24   : > { %s430_s27 = scalar_lea.vmem %s429_s26, 64  ;;  %p431_p9 = scmp.lt.s32.totalorder %s610_s4, %s429_s26 }
  0x25   : > { %p426_p6 = pnand %p424_p3, %p410_p5  ;;  %p432_p4 = scmp.lt.s32.totalorder %s430_s27, %s423_s20 }
  0x27   : > { %p427_p11 = pneg %p426_p6  ;;  %p433_p10 = por %p432_p4, %p431_p9 }
  0x29   : > { %p434_p12 = pnand %p433_p10, %p427_p11 }
  0x2b   : > { %437 = shalt.err (!%p434_p12)
}
  0x2c   : > { %353 = dma.hbm_to_vmem [thread:$0]  (!%p614_p0), %s608_s30, 32, %s610_s4, %s138_s6  }
  0x2d   : > { %p724_p1 = scmp.lt.s32.totalorder %s520_s14, 3  ;;  %p725_p2 = scmp.ge.s32.totalorder %s520_s14, 1 }
  0x2f   : > { %p155_p5 = pnand %p725_p2, %p724_p1 }
  0x30   : > { %s650_s28 = sand.u32 (!%p155_p5), 1, %s504_s10  }
  0x31   : > { %158 = sbr.rel (%p155_p5) target bundleno = 101 (0x65), region = 28  ;;  %s339_s29 = sshll.u32 (!%p155_p5), %s650_s28, 1 }
  0x32   : > { %s161_s3 = scalar_lea.sflag (!%p155_p5), [#allocation3], %s650_s28  ;;  %s164_s7 = scalar_lea.vmem (!%p155_p5), [#allocation2], %s339_s29 }
  0x38   : > { %491 = dma.done.wait (%p586_p8), %s161_s3, 32  }
  0x39   : > { %493 = vsyncadd (%p586_p8), %s161_s3, 4294967264  ;;  %v197_v0 = vlaneseq  ;;  %s341_s30 = sshll.u32 %s512_s12, 1  ;;  %v193_v11 = vld [vmem:[%s164_s7] sm:$0x3]  ;;  %s188_s5 = scalar_lea.vmem [#allocation5], %s339_s29 }
  0x3a   : > { %v205_v1 = vstv %s341_s30  ;;  %v194_v14 = vmul.f32 6.2853937, %v193_v11  ;;  %v195_v15 = vld [vmem:[%s716_s1] sm:$0x3]  ;;  %s236_s6 = sshll.u32 %s188_s5, 4  ;;  %s343_s8 = sshll.u32 %s512_s12, 5  ;;  %s663_s6 = int_to_ptr.vmem [resolvable:$true] %s236_s6 }
  0x3b   : > { %v198_v2 = vshrl.u32 %v197_v0, 7  ;;  %v203_v3 = vand.u32 127, %v197_v0  ;;  %s668_s18 = scalar_lea.hbm %s717_s2, %s343_s8  ;;  %s222_s19 = scalar_lea.sflag [#allocation4], %s650_s28 }
  0x3c   : > { %v196_v18 = vadd.f32 %v195_v15, %v194_v14  ;;  %s438_s20 = scalar_lea.vmem %s663_s6, 32  ;;  %p726_p9 = scmp.ne.s32.totalorder %s721_s22, 0 }
  0x3d   : > { %v206_v4 = vadd.s32 %v205_v1, %v198_v2  ;;  %p439_p8 = scmp.ne.s32.totalorder %s663_s6, %s438_s20  ;;  %s523_s12 = smov [#allocation5]  }
  0x3e   : > { %s442_s25 = sshll.u32 %s523_s12, 4  ;;  %s443_s25 = int_to_ptr.vmem [resolvable:$false] %s442_s25 }
  0x3f   : > { %v207_v5 = vmul.u32 128, %v206_v4  ;;  %p440_p11 = pnand %p439_p8, %p726_p9  ;;  %s444_s26 = scalar_lea.vmem %s443_s25, 64 }
  0x40   : > { %p445_p7 = scmp.lt.s32.totalorder %s663_s6, %s443_s25  ;;  %p446_p13 = scmp.lt.s32.totalorder %s444_s26, %s438_s20 }
  0x41   : > { %v208_v6 = vadd.s32 %v207_v5, %v203_v3  ;;  %p441_p0 = pneg %p440_p11 }
  0x42   : > { %p447_p3 = por %p446_p13, %p445_p7 }
  0x43   : > { %v209_v7 = vxor.u32 1234, %v208_v6 }
  0x44   : > { %p448_p6 = pnand %p447_p3, %p441_p0 }
  0x45   : > { %v210_v8 = vshrl.u32 %v209_v7, 16 }
  0x47   : > { %v211_v9 = vxor.u32 %v210_v8, %v209_v7 }
  0x49   : > { %v212_v10 = vmul.u32 2146121005, %v211_v9 }
  0x4b   : > { %v213_v12 = vshrl.u32 %v212_v10, 15 }
  0x4d   : > { %v214_v13 = vxor.u32 %v213_v12, %v212_v10 }
  0x4f   : > { %v215_v16 = vmul.u32 2221713035, %v214_v13 }
  0x51   : > { %v216_v17 = vshrl.u32 %v215_v16, 16 }
  0x53   : > { %v217_v19 = vxor.u32 %v216_v17, %v215_v16 }
  0x55   : > { %vm218_vm0 = vcmp.ge.u32.totalorder %v217_v19, 429496730 }
  0x56   : > { %v219_v20 = vsel %vm218_vm0, %v196_v18, 0.0 }
  0x57   : > { %220 = vst [vmem:[%s188_s5] sm:$0x3] %v219_v20 }
  0x58   : > { %451 = shalt.err (!%p448_p6)
}
  0x59   : > { %s452_s27 = scalar_lea.hbm %s668_s18, 32  ;;  %s456_s3 = scalar_lea.hbm %s717_s2, 64 }
  0x5a   : > { %p453_p4 = scmp.ne.s32.totalorder %s668_s18, %s452_s27  ;;  %p457_p1 = scmp.lt.u32.totalorder %s668_s18, %s717_s2 }
  0x5b   : > { %p458_p2 = scmp.lt.u32.totalorder %s456_s3, %s452_s27  ;;  %p460_p8 = scmp.lt.u32.totalorder %s452_s27, %s668_s18 }
  0x5c   : > { %p454_p10 = pnand %p453_p4, %p726_p9 }
  0x5d   : > { %p459_p5 = por %p458_p2, %p457_p1 }
  0x5e   : > { %p455_p12 = pneg %p454_p10 }
  0x5f   : > { %p461_p11 = por %p460_p8, %p459_p5 }
  0x61   : > { %p462_p0 = pnand %p461_p11, %p455_p12 }
  0x63   : > { %465 = shalt.err (!%p462_p0)
}
  0x64   : > { %348 = dma.vmem_to_hbm [thread:$0]  (%p726_p9), %s663_s6, 32, %s668_s18, %s222_s19  }
  0x65 PF: > { %s248_s21 = sand.u32 1, %s500_s9   ;;  %p727_p7 = scmp.ne.s32.totalorder %s722_s24, 0 }
  0x66   : > { %p728_p13 = scmp.ge.s32.totalorder %s520_s14, 2  ;;  %s249_s4 = scalar_lea.sflag [#allocation4], %s248_s21 }
  0x68   : > { %p355_p3 = pnand %p728_p13, %p727_p7 }
  0x6a   : > { %495 = dma.done.wait (!%p355_p3), %s249_s4, 32  }
  0x6b   : > { %497 = vsyncadd (!%p355_p3), %s249_s4, 4294967264  ;;  %s18_s14 = sadd.s32 1, %s520_s14   ;;  %s729_s9 = smov %s504_s10 }
  0x6c   : > { %p15_p6 = scmp.ge.s32.totalorder %s18_s14, 4   ;;  %s730_s10 = smov %s508_s11 }
  0x6d   : > { %s731_s11 = smov %s595_s23  ;;  %s732_s12 = smov %s516_s13 }
  0x6e   : > { %s733_s13 = smov %s735_s17  ;;  %17 = sbr.rel (!%p15_p6) target bundleno = 6 (0x6), region = 76 }
  0x75   :  { %254 = vsyncpa [#allocation3], 1 }
  0x76   :  { %256 = vsyncpa [#allocation3 + $0x1], 1 }
  0x77   :  { %257 = vsyncpa [#allocation4], 1 }
  0x78   :  { %259 = vsyncpa [#allocation4 + $0x1], 1 }

</bundles_post_ra>
